<compile_context>
chip_gen: v7x
topology: tpu7x:2x2x1
jax: 0.10.0
libtpu: 0.0.40
codegen_flags: <defaults>
</compile_context>

<pallas_src>
import jax
import jax.numpy as jnp
from jax.experimental import pallas as pl
from jax.experimental.pallas import tpu as pltpu

EPS = 1e-5


def _make_fused_kernel(num_hidden):
    """Builds a kernel running `num_hidden` (Linear->BN->ReLU) layers + final Linear."""

    def kernel(*refs):
        # refs = (x_ref,
        #         [w_i, gamma_i, beta_i] for each hidden layer,
        #         w_last, b_last,
        #         o_ref)
        x_ref = refs[0]
        o_ref = refs[-1]

        h = x_ref[...]
        idx = 1
        for _ in range(num_hidden):
            w_ref, gamma_ref, beta_ref = refs[idx], refs[idx + 1], refs[idx + 2]
            idx += 3

            # Linear (hidden bias omitted: exactly cancelled by BN mean subtraction).
            y = jnp.dot(h, w_ref[...], preferred_element_type=jnp.float32)

            # BatchNorm1d, training-mode batch statistics (biased variance).
            mean = jnp.mean(y, axis=0, keepdims=True)
            diff = y - mean
            var = jnp.mean(diff * diff, axis=0, keepdims=True)
            # Fold gamma into the per-feature scale on the (1, Cout) row;
            # rsqrt lowers to the EUP slot (free alongside VPU work).
            scale = jax.lax.rsqrt(var + EPS) * gamma_ref[...]

            # ReLU (act_first=False -> activation after the norm).
            h = jnp.maximum(diff * scale + beta_ref[...], 0.0)
            # Dropout(p=0.0) is the identity -> nothing to do.

        # Plain last Linear layer (with bias).
        w_ref, b_ref = refs[idx], refs[idx + 1]
        o_ref[...] = (
            jnp.dot(h, w_ref[...], preferred_element_type=jnp.float32) + b_ref[...]
        )

    return kernel


def _full_block(shape):
    # Whole-array block (satisfies the (8,128) rule because block == array dims).
    return pl.BlockSpec(shape, lambda i: tuple(0 for _ in shape))


def mlp_forward(x, params):
    """Single fused pallas_call for the entire MLP forward pass."""
    n, _ = x.shape
    hidden = params["hidden"]
    w_last, b_last = params["final"]
    cout = w_last.shape[1]

    inputs = [x]
    in_specs = [_full_block(x.shape)]
    for (w, _b, gamma, beta) in hidden:
        # hidden bias `_b` intentionally not passed: BN mean-subtraction cancels it.
        inputs += [w, gamma, beta]
        in_specs += [
            _full_block(w.shape),
            _full_block(gamma.shape),
            _full_block(beta.shape),
        ]
    inputs += [w_last, b_last]
    in_specs += [_full_block(w_last.shape), _full_block(b_last.shape)]

    return pl.pallas_call(
        _make_fused_kernel(len(hidden)),
        out_shape=jax.ShapeDtypeStruct((n, cout), jnp.float32),
        grid=(1,),
        in_specs=in_specs,
        out_specs=_full_block((n, cout)),
        compiler_params=pltpu.CompilerParams(
            dimension_semantics=("arbitrary",)
        ),
    )(*inputs)


def mlp_reference(x, params):
    """Pure-JAX reference mirroring the PyTorch forward (training-mode BN)."""
    h = x
    for (w, b, gamma, beta) in params["hidden"]:
        y = h @ w + b
        mean = jnp.mean(y, axis=0, keepdims=True)
        var = jnp.mean((y - mean) ** 2, axis=0, keepdims=True)
        y = (y - mean) / jnp.sqrt(var + EPS) * gamma + beta
        h = jnp.maximum(y, 0.0)
    w, b = params["final"]
    return h @ w + b


def init_params(key, channel_list):
    """Deterministic init; Linear weights use torch-style U(-1/sqrt(fan_in), ..)."""
    hidden = []
    final = None
    n_layers = len(channel_list) - 1
    for i in range(n_layers):
        cin, cout = channel_list[i], channel_list[i + 1]
        key, kw, kb, kg, kbeta = jax.random.split(key, 5)
        bound = 1.0 / jnp.sqrt(cin)
        w = jax.random.uniform(kw, (cin, cout), jnp.float32, -bound, bound)
        b = jax.random.uniform(kb, (1, cout), jnp.float32, -bound, bound)
        if i < n_layers - 1:
            # non-trivial gamma/beta to actually exercise the BN affine path
            gamma = 1.0 + 0.1 * jax.random.normal(kg, (1, cout), jnp.float32)
            beta = 0.1 * jax.random.normal(kbeta, (1, cout), jnp.float32)
            hidden.append((w, b, gamma, beta))
        else:
            final = (w, b)
    return {"hidden": hidden, "final": final}


if __name__ == "__main__":
    # channel_list = [16, 32, 32, 8]  (>= 2 entries, as the module asserts)
    channel_list = [16, 32, 32, 8]
    batch = 8

    key = jax.random.PRNGKey(0)
    key, kx = jax.random.split(key)
    x = jax.random.normal(kx, (batch, channel_list[0]), jnp.float32)
    params = init_params(key, channel_list)

    out = mlp_forward(x, params)
    out = jax.block_until_ready(out)

    ref = mlp_reference(x, params)
    assert out.shape == (batch, channel_list[-1])
    assert jnp.allclose(out, ref, atol=1e-4, rtol=1e-4), "mismatch vs reference"

    print("KERNEL_OK")
</pallas_src>

<mosaic_0001>
module attributes {stable_mosaic.version = 11 : i64} {
  func.func @kernel(%arg0: i32, %arg1: memref<8x16xf32, #tpu.memory_space<vmem>>, %arg2: memref<16x32xf32, #tpu.memory_space<vmem>>, %arg3: memref<1x32xf32, #tpu.memory_space<vmem>>, %arg4: memref<1x32xf32, #tpu.memory_space<vmem>>, %arg5: memref<32x32xf32, #tpu.memory_space<vmem>>, %arg6: memref<1x32xf32, #tpu.memory_space<vmem>>, %arg7: memref<1x32xf32, #tpu.memory_space<vmem>>, %arg8: memref<32x8xf32, #tpu.memory_space<vmem>>, %arg9: memref<1x8xf32, #tpu.memory_space<vmem>>, %arg10: memref<8x8xf32, #tpu.memory_space<vmem>>) attributes {dimension_semantics = [#tpu.dimension_semantics<arbitrary>], iteration_bounds = array<i64: 1>, scalar_prefetch = 0 : i64, scratch_operands = 0 : i64, tpu.core_type = #tpu.core_type<tc>, window_params = [{pipeline_mode = #tpu.pipeline_mode<synchronous>, transform_indices = @transform_0, window_bounds = array<i64: 8, 16>}, {pipeline_mode = #tpu.pipeline_mode<synchronous>, transform_indices = @transform_1, window_bounds = array<i64: 16, 32>}, {pipeline_mode = #tpu.pipeline_mode<synchronous>, transform_indices = @transform_2, window_bounds = array<i64: 1, 32>}, {pipeline_mode = #tpu.pipeline_mode<synchronous>, transform_indices = @transform_3, window_bounds = array<i64: 1, 32>}, {pipeline_mode = #tpu.pipeline_mode<synchronous>, transform_indices = @transform_4, window_bounds = array<i64: 32, 32>}, {pipeline_mode = #tpu.pipeline_mode<synchronous>, transform_indices = @transform_5, window_bounds = array<i64: 1, 32>}, {pipeline_mode = #tpu.pipeline_mode<synchronous>, transform_indices = @transform_6, window_bounds = array<i64: 1, 32>}, {pipeline_mode = #tpu.pipeline_mode<synchronous>, transform_indices = @transform_7, window_bounds = array<i64: 32, 8>}, {pipeline_mode = #tpu.pipeline_mode<synchronous>, transform_indices = @transform_8, window_bounds = array<i64: 1, 8>}, {pipeline_mode = #tpu.pipeline_mode<synchronous>, transform_indices = @transform_9, window_bounds = array<i64: 8, 8>}]} {
    %c0 = arith.constant 0 : index
    %c0_0 = arith.constant 0 : index
    %0 = vector.load %arg1[%c0, %c0_0] : memref<8x16xf32, #tpu.memory_space<vmem>>, vector<8x16xf32>
    %c0_1 = arith.constant 0 : index
    %c0_2 = arith.constant 0 : index
    %1 = vector.load %arg2[%c0_1, %c0_2] : memref<16x32xf32, #tpu.memory_space<vmem>>, vector<16x32xf32>
    %cst = arith.constant dense<0.000000e+00> : vector<8x32xf32>
    %2 = tpu.matmul %0, %1, %cst {dimension_numbers = #tpu.dot_dimension_numbers<[1], [0], [0], [1], [0, 0, 1, 1], [], []>} : vector<8x16xf32>, vector<16x32xf32>, vector<8x32xf32> -> vector<8x32xf32>
    %cst_3 = arith.constant dense<0.000000e+00> : vector<32xf32>
    %3 = vector.multi_reduction <add>, %2, %cst_3 [0] : vector<8x32xf32> to vector<32xf32>
    %4 = vector.shape_cast %3 : vector<32xf32> to vector<1x32xf32>
    %cst_4 = arith.constant 8.000000e+00 : f32
    %5 = vector.broadcast %cst_4 : f32 to vector<1x32xf32>
    %6 = arith.divf %4, %5 : vector<1x32xf32>
    %7 = vector.broadcast %6 : vector<1x32xf32> to vector<8x32xf32>
    %8 = arith.subf %2, %7 : vector<8x32xf32>
    %9 = arith.mulf %8, %8 : vector<8x32xf32>
    %cst_5 = arith.constant dense<0.000000e+00> : vector<32xf32>
    %10 = vector.multi_reduction <add>, %9, %cst_5 [0] : vector<8x32xf32> to vector<32xf32>
    %11 = vector.shape_cast %10 : vector<32xf32> to vector<1x32xf32>
    %cst_6 = arith.constant 8.000000e+00 : f32
    %12 = vector.broadcast %cst_6 : f32 to vector<1x32xf32>
    %13 = arith.divf %11, %12 : vector<1x32xf32>
    %cst_7 = arith.constant 9.99999974E-6 : f32
    %14 = vector.broadcast %cst_7 : f32 to vector<1x32xf32>
    %15 = arith.addf %13, %14 : vector<1x32xf32>
    %16 = math.rsqrt %15 : vector<1x32xf32>
    %c0_8 = arith.constant 0 : index
    %c0_9 = arith.constant 0 : index
    %17 = vector.load %arg3[%c0_8, %c0_9] : memref<1x32xf32, #tpu.memory_space<vmem>>, vector<1x32xf32>
    %18 = arith.mulf %16, %17 : vector<1x32xf32>
    %19 = vector.broadcast %18 : vector<1x32xf32> to vector<8x32xf32>
    %20 = arith.mulf %8, %19 : vector<8x32xf32>
    %c0_10 = arith.constant 0 : index
    %c0_11 = arith.constant 0 : index
    %21 = vector.load %arg4[%c0_10, %c0_11] : memref<1x32xf32, #tpu.memory_space<vmem>>, vector<1x32xf32>
    %22 = vector.broadcast %21 : vector<1x32xf32> to vector<8x32xf32>
    %23 = arith.addf %20, %22 : vector<8x32xf32>
    %cst_12 = arith.constant 0.000000e+00 : f32
    %24 = vector.broadcast %cst_12 : f32 to vector<8x32xf32>
    %25 = arith.maximumf %23, %24 : vector<8x32xf32>
    %c0_13 = arith.constant 0 : index
    %c0_14 = arith.constant 0 : index
    %26 = vector.load %arg5[%c0_13, %c0_14] : memref<32x32xf32, #tpu.memory_space<vmem>>, vector<32x32xf32>
    %cst_15 = arith.constant dense<0.000000e+00> : vector<8x32xf32>
    %27 = tpu.matmul %25, %26, %cst_15 {dimension_numbers = #tpu.dot_dimension_numbers<[1], [0], [0], [1], [0, 0, 1, 1], [], []>} : vector<8x32xf32>, vector<32x32xf32>, vector<8x32xf32> -> vector<8x32xf32>
    %cst_16 = arith.constant dense<0.000000e+00> : vector<32xf32>
    %28 = vector.multi_reduction <add>, %27, %cst_16 [0] : vector<8x32xf32> to vector<32xf32>
    %29 = vector.shape_cast %28 : vector<32xf32> to vector<1x32xf32>
    %cst_17 = arith.constant 8.000000e+00 : f32
    %30 = vector.broadcast %cst_17 : f32 to vector<1x32xf32>
    %31 = arith.divf %29, %30 : vector<1x32xf32>
    %32 = vector.broadcast %31 : vector<1x32xf32> to vector<8x32xf32>
    %33 = arith.subf %27, %32 : vector<8x32xf32>
    %34 = arith.mulf %33, %33 : vector<8x32xf32>
    %cst_18 = arith.constant dense<0.000000e+00> : vector<32xf32>
    %35 = vector.multi_reduction <add>, %34, %cst_18 [0] : vector<8x32xf32> to vector<32xf32>
    %36 = vector.shape_cast %35 : vector<32xf32> to vector<1x32xf32>
    %cst_19 = arith.constant 8.000000e+00 : f32
    %37 = vector.broadcast %cst_19 : f32 to vector<1x32xf32>
    %38 = arith.divf %36, %37 : vector<1x32xf32>
    %cst_20 = arith.constant 9.99999974E-6 : f32
    %39 = vector.broadcast %cst_20 : f32 to vector<1x32xf32>
    %40 = arith.addf %38, %39 : vector<1x32xf32>
    %41 = math.rsqrt %40 : vector<1x32xf32>
    %c0_21 = arith.constant 0 : index
    %c0_22 = arith.constant 0 : index
    %42 = vector.load %arg6[%c0_21, %c0_22] : memref<1x32xf32, #tpu.memory_space<vmem>>, vector<1x32xf32>
    %43 = arith.mulf %41, %42 : vector<1x32xf32>
    %44 = vector.broadcast %43 : vector<1x32xf32> to vector<8x32xf32>
    %45 = arith.mulf %33, %44 : vector<8x32xf32>
    %c0_23 = arith.constant 0 : index
    %c0_24 = arith.constant 0 : index
    %46 = vector.load %arg7[%c0_23, %c0_24] : memref<1x32xf32, #tpu.memory_space<vmem>>, vector<1x32xf32>
    %47 = vector.broadcast %46 : vector<1x32xf32> to vector<8x32xf32>
    %48 = arith.addf %45, %47 : vector<8x32xf32>
    %cst_25 = arith.constant 0.000000e+00 : f32
    %49 = vector.broadcast %cst_25 : f32 to vector<8x32xf32>
    %50 = arith.maximumf %48, %49 : vector<8x32xf32>
    %c0_26 = arith.constant 0 : index
    %c0_27 = arith.constant 0 : index
    %51 = vector.load %arg8[%c0_26, %c0_27] : memref<32x8xf32, #tpu.memory_space<vmem>>, vector<32x8xf32>
    %cst_28 = arith.constant dense<0.000000e+00> : vector<8x8xf32>
    %52 = tpu.matmul %50, %51, %cst_28 {dimension_numbers = #tpu.dot_dimension_numbers<[1], [0], [0], [1], [0, 0, 1, 1], [], []>} : vector<8x32xf32>, vector<32x8xf32>, vector<8x8xf32> -> vector<8x8xf32>
    %c0_29 = arith.constant 0 : index
    %c0_30 = arith.constant 0 : index
    %53 = vector.load %arg9[%c0_29, %c0_30] : memref<1x8xf32, #tpu.memory_space<vmem>>, vector<1x8xf32>
    %54 = vector.broadcast %53 : vector<1x8xf32> to vector<8x8xf32>
    %55 = arith.addf %52, %54 : vector<8x8xf32>
    %c0_31 = arith.constant 0 : index
    %c0_32 = arith.constant 0 : index
    %56 = vector.load %arg10[%c0_31, %c0_32] : memref<8x8xf32, #tpu.memory_space<vmem>>, vector<8x8xf32>
    tpu.vector_store %arg10[%c0_31, %c0_32], %55 {strides = array<i32>} : memref<8x8xf32, #tpu.memory_space<vmem>>, vector<8x8xf32>,
    return
  }
  func.func @transform_0(%arg0: i32) -> (i32, i32) {
    %c0_i32 = arith.constant 0 : i32
    %c0_i32_0 = arith.constant 0 : i32
    %c0_i32_1 = arith.constant 0 : i32
    return %c0_i32, %c0_i32_0 : i32, i32
  }
  func.func @transform_1(%arg0: i32) -> (i32, i32) {
    %c0_i32 = arith.constant 0 : i32
    %c0_i32_0 = arith.constant 0 : i32
    %c0_i32_1 = arith.constant 0 : i32
    return %c0_i32, %c0_i32_0 : i32, i32
  }
  func.func @transform_2(%arg0: i32) -> (i32, i32) {
    %c0_i32 = arith.constant 0 : i32
    %c0_i32_0 = arith.constant 0 : i32
    %c0_i32_1 = arith.constant 0 : i32
    return %c0_i32, %c0_i32_0 : i32, i32
  }
  func.func @transform_3(%arg0: i32) -> (i32, i32) {
    %c0_i32 = arith.constant 0 : i32
    %c0_i32_0 = arith.constant 0 : i32
    %c0_i32_1 = arith.constant 0 : i32
    return %c0_i32, %c0_i32_0 : i32, i32
  }
  func.func @transform_4(%arg0: i32) -> (i32, i32) {
    %c0_i32 = arith.constant 0 : i32
    %c0_i32_0 = arith.constant 0 : i32
    %c0_i32_1 = arith.constant 0 : i32
    return %c0_i32, %c0_i32_0 : i32, i32
  }
  func.func @transform_5(%arg0: i32) -> (i32, i32) {
    %c0_i32 = arith.constant 0 : i32
    %c0_i32_0 = arith.constant 0 : i32
    %c0_i32_1 = arith.constant 0 : i32
    return %c0_i32, %c0_i32_0 : i32, i32
  }
  func.func @transform_6(%arg0: i32) -> (i32, i32) {
    %c0_i32 = arith.constant 0 : i32
    %c0_i32_0 = arith.constant 0 : i32
    %c0_i32_1 = arith.constant 0 : i32
    return %c0_i32, %c0_i32_0 : i32, i32
  }
  func.func @transform_7(%arg0: i32) -> (i32, i32) {
    %c0_i32 = arith.constant 0 : i32
    %c0_i32_0 = arith.constant 0 : i32
    %c0_i32_1 = arith.constant 0 : i32
    return %c0_i32, %c0_i32_0 : i32, i32
  }
  func.func @transform_8(%arg0: i32) -> (i32, i32) {
    %c0_i32 = arith.constant 0 : i32
    %c0_i32_0 = arith.constant 0 : i32
    %c0_i32_1 = arith.constant 0 : i32
    return %c0_i32, %c0_i32_0 : i32, i32
  }
  func.func @transform_9(%arg0: i32) -> (i32, i32) {
    %c0_i32 = arith.constant 0 : i32
    %c0_i32_0 = arith.constant 0 : i32
    %c0_i32_1 = arith.constant 0 : i32
    return %c0_i32, %c0_i32_0 : i32, i32
  }
}

</mosaic_0001>

<bundles_post_ra>
// kernel: tpu_custom_call.1
= control target key start
LH: loop header
LB: loop body
LE: loop exit
PB: predicated region body
PF: predicated region fallthrough
CT: control target
= control target key end

     0   :  { %14 = vsyncpa [#allocation3], 0  ;;  %s677_s0 = inlined_call_operand.hbm [shape: f32[8,16], index: 0, kind: input, shape index: {}]   ;;  %s678_s1 = inlined_call_operand.vmem [shape: f32[16,32], index: 1, kind: input, shape index: {}]   ;;  %s679_s2 = inlined_call_operand.vmem [shape: f32[1,32], index: 2, kind: input, shape index: {}]   ;;  %s680_s3 = inlined_call_operand.vmem [shape: f32[1,32], index: 3, kind: input, shape index: {}]   ;;  %s681_s4 = inlined_call_operand.vmem [shape: f32[32,32], index: 4, kind: input, shape index: {}]   ;;  %s682_s5 = inlined_call_operand.hbm [shape: f32[1,32], index: 5, kind: input, shape index: {}]   ;;  %s683_s6 = inlined_call_operand.vmem [shape: f32[1,32], index: 6, kind: input, shape index: {}]   ;;  %s684_s7 = inlined_call_operand.vmem [shape: f32[32,8], index: 7, kind: input, shape index: {}]   ;;  %s685_s8 = inlined_call_operand.vmem [shape: f32[1,8], index: 8, kind: input, shape index: {}]   ;;  %s686_s9 = inlined_call_operand.hbm [shape: f32[8,8], index: 9, kind: output, shape index: {}]  }
   0x1   :  { %15 = vsyncpa [#allocation6], 0 }
   0x2   :  { %16 = vsyncpa [#allocation4], 0  ;;  %s532_s30 = smov [#allocation2]   ;;  %s533_s11 = smov [#allocation5]  }
   0x3   :  { %s23_s10 = sshll.u32 %s532_s30, 4  ;;  %s41_s12 = sshll.u32 %s533_s11, 4  ;;  %s24_s10 = int_to_ptr.vmem [resolvable:$true] %s23_s10  ;;  %s42_s12 = int_to_ptr.vmem [resolvable:$true] %s41_s12 }
   0x4   :  { %s460_s15 = scalar_lea.hbm %s677_s0, 128 }
   0x5   :  { %p461_p0 = scmp.ne.s32.totalorder %s677_s0, %s460_s15  ;;  %p464_p1 = scmp.lt.u32.totalorder %s460_s15, %s677_s0 }
   0x7   :  { %p466_p2 = pnand %p464_p1, %p461_p0 }
   0x9   :  { %469 = shalt.err (!%p466_p2)
}
   0xa   :  { %s470_s20 = scalar_lea.vmem %s24_s10, 128  ;;  %p475_p4 = scmp.lt.s32.totalorder %s24_s10, %s24_s10 }
   0xb   :  { %p471_p3 = scmp.ne.s32.totalorder %s24_s10, %s470_s20  ;;  %p476_p5 = scmp.lt.s32.totalorder %s470_s20, %s470_s20 }
   0xd   :  { %p477_p6 = por %p476_p5, %p475_p4 }
   0xf   :  { %p478_p7 = pnand %p477_p6, %p471_p3 }
  0x11   :  { %481 = shalt.err (!%p478_p7)
}
  0x12   :  { %26 = dma.hbm_to_vmem [thread:$0]  %s677_s0, 128, %s24_s10, [#allocation3]  }
  0x13   :  { %s482_s25 = scalar_lea.hbm %s682_s5, 16 }
  0x14   :  { %p483_p8 = scmp.ne.s32.totalorder %s682_s5, %s482_s25  ;;  %p486_p9 = scmp.lt.u32.totalorder %s482_s25, %s682_s5 }
  0x16   :  { %p488_p10 = pnand %p486_p9, %p483_p8 }
  0x18   :  { %491 = shalt.err (!%p488_p10)
}
  0x19   :  { %s492_s30 = scalar_lea.vmem %s42_s12, 16  ;;  %s496_s11 = scalar_lea.vmem %s42_s12, 32 }
  0x1a   :  { %p493_p11 = scmp.ne.s32.totalorder %s42_s12, %s492_s30  ;;  %p497_p12 = scmp.lt.s32.totalorder %s42_s12, %s42_s12 }
  0x1b   :  { %p498_p13 = scmp.lt.s32.totalorder %s496_s11, %s492_s30 }
  0x1d   :  { %p499_p0 = por %p498_p13, %p497_p12 }
  0x1f   :  { %p500_p1 = pnand %p499_p0, %p493_p11 }
  0x21   :  { %503 = shalt.err (!%p500_p1)
}
  0x22   :  { %44 = dma.hbm_to_vmem [thread:$0]  %s682_s5, 16, %s42_s12, [#allocation6]  }
  0x23   :  { %526 = dma.done.wait [#allocation3], 128  }
  0x24   :  { %527 = vsyncadd [#allocation3], 4294967168 }
  0x25   :  { %528 = dma.done.wait [#allocation6], 16  }
  0x26   :  { %529 = vsyncadd [#allocation6], 4294967280  ;;  %v534_v0 = vmov 0.0|0.0   ;;  %vm535_vm0 = vmmov 0   ;;  %v536_v1 = vmov 0.0   ;;  %v58_v2 = vld [vmem:[%s678_s1] sm:$0xff]  ;;  %v158_v33 = vlaneseq }
  0x27   :  { %435 = vmatprep.subr.bf16.mxu0 %v534_v0  ;;  %410 = vmatprep.mubr.msk.f32.mxu0 %vm535_vm0, %v536_v1  ;;  %v59_v3 = vld [vmem:[%s678_s1 + $0x8] sm:$0xff]  ;;  %v57_v5 = vld [vmem:[#allocation2] sm:$0xff]  ;;  %vm60_vm1 = vcmask 130048   ;;  %v174_v9 = vld [vmem:[%s681_s4 + $0x10] sm:$0xff]  ;;  %vm134_vm2 = vcmask 261120   ;;  %s537_s13 = smov [#allocation7]  }
  0x28   :  { %438 = vmatprep.subr.bf16.mxu1 %v534_v0  ;;  %421 = vmatprep.mubr.msk.f32.mxu1 %vm535_vm0, %v536_v1  ;;  %v436_v4 = vpack.c.bf16 %v59_v3, %v58_v2  ;;  %v172_v6 = vld [vmem:[%s681_s4] sm:$0xff]  ;;  %v173_v7 = vld [vmem:[%s681_s4 + $0x8] sm:$0xff]  ;;  %v175_v10 = vld [vmem:[%s681_s4 + $0x18] sm:$0xff]  ;;  %v159_v34 = vshrl.u32 %v158_v33, 7  ;;  %s377_s14 = sshll.u32 %s537_s13, 4  ;;  %vm369_vm3 = vcmask 64512   ;;  %s378_s14 = int_to_ptr.vmem [resolvable:$true] %s377_s14 }
  0x29   :  { %v439_v8 = vpack.c.bf16 %v173_v7, %v172_v6  ;;  %v442_v11 = vpack.c.bf16 %v175_v10, %v174_v9  ;;  %v156_v35 = vld [vmem:[%s679_s2] sm:$0x1]  ;;  %v286_v45 = vld [vmem:[%s684_s7 + $0x8] sm:$0xff]  ;;  %v287_v47 = vld [vmem:[%s684_s7 + $0x10] sm:$0xff]  ;;  %s504_s15 = scalar_lea.vmem %s378_s14, 128  ;;  %p509_p3 = scmp.lt.s32.totalorder %s378_s14, %s378_s14 }
  0x2a   :  { %437 = vmatpush3.bf16.msra.mxu0 %v436_v4  ;;  %v160_v36 = vsub.s32 0, %v159_v34  ;;  %v388_v40 = vld [vmem:[%s680_s3] ss:$0 sm:$0xff]  ;;  %v288_v48 = vld [vmem:[%s684_s7 + $0x18] sm:$0xff]  ;;  %v269_v7 = vld [vmem:[#allocation5] sm:$0x1]  ;;  %p505_p2 = scmp.ne.s32.totalorder %s378_s14, %s504_s15  ;;  %p510_p4 = scmp.lt.s32.totalorder %s504_s15, %s504_s15 }
  0x2b   :  { %444 = vmatprep.subr.bf16.mxu0 %v534_v0  ;;  %440 = vmatpush3.bf16.msra.mxu1 %v439_v8  ;;  %v285_v44 = vld [vmem:[%s684_s7] sm:$0xff]  ;;  %v448_v49 = vpack.c.bf16 %v288_v48, %v287_v47 }
  0x2c   :  { %441 = vmatprep.subr.bf16.mxu1 %v534_v0  ;;  %v445_v46 = vpack.c.bf16 %v286_v45, %v285_v44  ;;  %p511_p5 = por %p510_p4, %p509_p3 }
  0x2d   :  { %411 = vmatmul.mubr.msk.f32.vlgmr.msra.gmra.mrb[0].mxu0 %vm60_vm1, %v57_v5 }
  0x2e   :  { %432 = vmatprep.mubr.msk.f32.mxu0 %vm535_vm0, %v536_v1  ;;  %446 = vmatpush3.bf16.msra.mxu0 %v445_v46  ;;  %p512_p6 = pnand %p511_p5, %p505_p2 }
  0x2f   :  { %443 = vmatpush3.bf16.msra.mxu1 %v442_v11  ;;  %447 = vmatprep.subr.bf16.mxu0 %v534_v0  ;;  %v390_v11 = vld [vmem:[%s683_s6] ss:$0 sm:$0xff] }
  0x32   :  { %449 = vmatpush3.bf16.msra.mxu0 %v448_v49 }
 0x100   :  { %v130_v12 = vpop.f32.mrb[0].mxu0 }
 0x101   :  { %v135_v13 = vsel %vm134_vm2, %v130_v12, 0.0  ;;  %v412_v14 = vpop.f32.mrb[1].mxu0 }
 0x102   :  { %v136_v15 = vrot.slane %v135_v13, 4 }
 0x104   :  { %v137_v16 = vadd.f32 %v136_v15, %v135_v13  ;;  %v391_v15 = vld [vmem:[%s685_s8] ss:$0 sm:$0xff] }
 0x106   :  { %v138_v17 = vrot.slane %v137_v16, 2 }
 0x108   :  { %v139_v18 = vadd.f32 %v138_v17, %v137_v16 }
 0x10a   :  { %v140_v19 = vrot.slane %v139_v18, 1 }
 0x10c   :  { %v141_v20 = vadd.f32 %v140_v19, %v139_v18 }
 0x10e   :  { %v143_v21 = vmul.f32 0.125, %v141_v20 }
 0x110   :  { %v144_v22 = vsub.f32 %v130_v12, %v143_v21 }
 0x112   :  { %v145_v23 = vmul.f32 %v144_v22, %v144_v22 }
 0x114   :  { %v146_v24 = vsel %vm134_vm2, %v145_v23, 0.0 }
 0x115   :  { %v147_v25 = vrot.slane %v146_v24, 4 }
 0x117   :  { %v148_v26 = vadd.f32 %v147_v25, %v146_v24 }
 0x119   :  { %v149_v27 = vrot.slane %v148_v26, 2 }
 0x11b   :  { %v150_v28 = vadd.f32 %v149_v27, %v148_v26 }
 0x11d   :  { %v151_v29 = vrot.slane %v150_v28, 1 }
 0x11f   :  { %v152_v30 = vadd.f32 %v151_v29, %v150_v28 }
 0x121   :  { %v153_v31 = vmul.f32 0.125, %v152_v30 }
 0x123   :  { %v154_v32 = vadd.f32 1e-05, %v153_v31 }
 0x125   :  { %456 = vrsqrt.f32 %v154_v32 }
 0x12f   :  { %v457_v37 = vpop.eup %456 }
 0x130   :  { %v157_v38 = vmul.f32 %v457_v37, %v156_v35 }
 0x132   :  { %v161_v39 = vrot.slane %v157_v38, %v160_v36 }
 0x134   :  { %v162_v41 = vmul.f32 %v161_v39, %v144_v22 }
 0x136   :  { %v170_v42 = vadd.f32 %v388_v40, %v162_v41 }
 0x138   :  { %v171_v43 = vmax.f32 %v170_v42, 0.0 }
 0x13a   :  { %422 = vmatmul.mubr.msk.f32.vlgmr.msra.gmra.mrb[0].mxu1 %vm134_vm2, %v171_v43 }
 0x20d   :  { %v245_v50 = vpop.f32.mrb[0].mxu1 }
 0x20e   :  { %v249_v51 = vsel %vm134_vm2, %v245_v50, 0.0  ;;  %v423_v52 = vpop.f32.mrb[1].mxu1 }
 0x20f   :  { %v250_v53 = vrot.slane %v249_v51, 4 }
 0x211   :  { %v251_v54 = vadd.f32 %v250_v53, %v249_v51 }
 0x213   :  { %v252_v55 = vrot.slane %v251_v54, 2 }
 0x215   :  { %v253_v56 = vadd.f32 %v252_v55, %v251_v54 }
 0x217   :  { %v254_v57 = vrot.slane %v253_v56, 1 }
 0x219   :  { %v255_v58 = vadd.f32 %v254_v57, %v253_v56 }
 0x21b   :  { %v256_v59 = vmul.f32 0.125, %v255_v58 }
 0x21d   :  { %v257_v60 = vsub.f32 %v245_v50, %v256_v59 }
 0x21f   :  { %v258_v61 = vmul.f32 %v257_v60, %v257_v60 }
 0x221   :  { %v259_v62 = vsel %vm134_vm2, %v258_v61, 0.0 }
 0x222   :  { %v260_v63 = vrot.slane %v259_v62, 4 }
 0x224   :  { %v261_v0 = vadd.f32 %v260_v63, %v259_v62 }
 0x226   :  { %v262_v1 = vrot.slane %v261_v0, 2 }
 0x228   :  { %v263_v2 = vadd.f32 %v262_v1, %v261_v0 }
 0x22a   :  { %v264_v3 = vrot.slane %v263_v2, 1 }
 0x22c   :  { %v265_v4 = vadd.f32 %v264_v3, %v263_v2 }
 0x22e   :  { %v266_v5 = vmul.f32 0.125, %v265_v4 }
 0x230   :  { %v267_v6 = vadd.f32 1e-05, %v266_v5 }
 0x232   :  { %458 = vrsqrt.f32 %v267_v6 }
 0x23c   :  { %v459_v8 = vpop.eup %458 }
 0x23d   :  { %v270_v9 = vmul.f32 %v459_v8, %v269_v7 }
 0x23f   :  { %v274_v10 = vrot.slane %v270_v9, %v160_v36 }
 0x241   :  { %v275_v12 = vmul.f32 %v274_v10, %v257_v60 }
 0x243   :  { %v283_v13 = vadd.f32 %v390_v11, %v275_v12 }
 0x245   :  { %v284_v14 = vmax.f32 %v283_v13, 0.0 }
 0x247   :  { %433 = vmatmul.mubr.msk.f32.vlgmr.msra.gmra.mrb[2].mxu0 %vm134_vm2, %v284_v14 }
 0x31a   :  { %v365_v16 = vpop.f32.mrb[2].mxu0 }
 0x31b   :  { %v366_v17 = vadd.f32 %v391_v15, %v365_v16  ;;  %v434_v18 = vpop.f32.mrb[3].mxu0 }
 0x31d   :  { %370 = vst.msk [vmem:[#allocation7] sm:$0xff] %vm369_vm3, %v366_v17 }
 0x31e   :  { %515 = shalt.err (!%p512_p6)
}
 0x31f   :  { %s516_s5 = scalar_lea.hbm %s686_s9, 128 }
 0x320   :  { %p517_p7 = scmp.ne.s32.totalorder %s686_s9, %s516_s5  ;;  %p520_p8 = scmp.lt.u32.totalorder %s516_s5, %s686_s9 }
 0x322   :  { %p522_p9 = pnand %p520_p8, %p517_p7 }
 0x324   :  { %525 = shalt.err (!%p522_p9)
}
 0x325   :  { %380 = dma.vmem_to_hbm [thread:$0]  %s378_s14, 128, %s686_s9, [#allocation4]  }
 0x326   :  { %530 = dma.done.wait [#allocation4], 128  }
 0x327   :  { %531 = vsyncadd [#allocation4], 4294967168 }
 0x328   :  { %384 = vsyncpa [#allocation3], 1 }
 0x329   :  { %385 = vsyncpa [#allocation6], 1 }
 0x32a   :  { %386 = vsyncpa [#allocation4], 1 }

</bundles_post_ra>
